<compile_context>
chip_gen: v6e
topology: v6e:2x2x1
jax: 0.10.0
libtpu: 0.0.40
codegen_flags: <defaults>
</compile_context>

<pallas_src>
import math

import jax
import jax.numpy as jnp
from jax.experimental import pallas as pl
from jax.experimental.pallas import tpu as pltpu


def _round_up(x, m):
    return -(-x // m) * m


def _lcm(a, b):
    return a * b // math.gcd(a, b)


# ------------------------------------------------------------------ kernel ---
def _patch_embed_kernel(x_ref, w_ref, pe_ref, o_ref):
    # x_ref : (TM, G*L)   f32   -- G patch rows packed per M-row
    # w_ref : (G*L, G*D)  bf16  -- kron(I_G, W^T); constant block (resident)
    # pe_ref: (TP, G*D)   f32   -- small PE block, TP = lcm(8, P2) (resident)
    # o_ref : (TM, G*D)   bf16  -- lane-dense when G*D % 128 == 0
    x = x_ref[...].astype(w_ref.dtype)          # in-kernel cast; hidden under DMA
    y = jnp.dot(x, w_ref[...], preferred_element_type=jnp.float32)
    tm = o_ref.shape[0]
    tp = pe_ref.shape[0]
    pe = pe_ref[...]
    if tm == tp:
        y = y + pe
    else:
        # TP % 8 == 0 by construction, so both reshapes are sublane-aligned
        # (layout-free): this is just a broadcast-add of the small PE block.
        y = (y.reshape(tm // tp, tp, -1) + pe[None, :, :]).reshape(tm, -1)
    o_ref[...] = y.astype(o_ref.dtype)


# ---------------------------------------------------------------- wrapper ----
def patch_embed_pallas(patches, w_t, pe, *, compute_dtype=jnp.bfloat16,
                       out_dtype=jnp.bfloat16):
    """patches: [BN, P, L] patch rows, w_t: [L, D] (= W^T), pe: [P, D].
    Returns [BN, P, D] = patches @ w_t + pe[None].

    Defaults: bf16 activations/weights/output with f32 MXU accumulation and an
    f32 PE add. Callers needing f32-exact embeddings should pass
    compute_dtype=out_dtype=jnp.float32.
    """
    BN, P, L = patches.shape
    P_pe, D = pe.shape
    assert P_pe == P

    # --- packing factor: make both the x block (G*L lanes) and the output
    # block (G*D lanes) lane-dense -------------------------------------------
    g_out = 128 // math.gcd(D, 128)
    g_in = 128 // math.gcd(L, 128)
    G = _lcm(g_out, g_in)
    if G > 32:                              # cap; keep output density if we can
        G = g_out if g_out <= 32 else 32
    if (G * L) * (G * D) * 2 > (4 << 20):   # keep kron(I_G, W^T) small in VMEM
        G = g_out if (g_out * L) * (g_out * D) * 2 <= (4 << 20) else 1

    # --- pad patches per series to a multiple of G ----------------------------
    # TODO(synk): when P % G != 0 this pad (and the final [:, :P] slice) copies
    # the activation once in HBM; a masked-tail kernel would avoid it.
    P_pad = _round_up(P, G)
    if P_pad != P:
        patches = jnp.pad(patches, ((0, 0), (0, P_pad - P), (0, 0)))
        pe = jnp.pad(pe, ((0, P_pad - P), (0, 0)))
    P2 = P_pad // G

    x2 = patches.reshape(BN * P2, G * L)            # row-major reshape; stays f32
    w2 = jnp.kron(jnp.eye(G, dtype=w_t.dtype), w_t).astype(compute_dtype)
    # PE pattern along packed rows repeats every P2 rows; pass a small
    # sublane-aligned block of tp = lcm(8, P2) rows, broadcast-added in-kernel.
    tp = _lcm(8, P2)
    pe_blk = jnp.tile(pe.reshape(P2, G * D), (tp // P2, 1)).astype(jnp.float32)

    # --- VMEM accounting (lane padding + resident blocks) & tile size ---------
    lanes_in = _round_up(G * L, 128)
    lanes_out = _round_up(G * D, 128)
    row_bytes = 2 * (lanes_in * 4 + lanes_out * 2)          # double-buffered in+out
    # Weight/PE are requested single-buffered but budgeted at 2x to stay safe.
    fixed_bytes = 2 * (_round_up(G * L, 16) * lanes_out * 2 + tp * lanes_out * 4)
    try:
        vmem_cap = pltpu.get_tpu_info().vmem_capacity_bytes
    except Exception:                                       # noqa: BLE001
        vmem_cap = 64 * 1024 * 1024                         # v7x-safe fallback
    budget = min(max(vmem_cap // 4, 8 << 20), 24 << 20)     # <=24 MiB, <=1/4 VMEM

    avail = budget - fixed_bytes
    rows_budget = max(int(avail // row_bytes), tp) if avail > 0 else tp
    tm = min(rows_budget, max(2048, tp))    # ~1-2K packed rows is near HBM roofline
    tm = max(tp, (tm // tp) * tp)
    M2 = BN * P2
    if M2 >= 2 * tp:                        # >= 2 grid steps -> megacore on v7x
        tm = min(tm, _round_up(M2, 2 * tp) // 2)
    tm = min(tm, _round_up(M2, tp))

    M2_pad = _round_up(M2, tm)
    if M2_pad != M2:
        # TODO(synk): handle the ragged tail with a masked final tile instead.
        x2 = jnp.pad(x2, ((0, M2_pad - M2), (0, 0)))
    grid = (M2_pad // tm,)

    footprint = 2 * tm * (lanes_in * 4 + lanes_out * 2) + fixed_bytes
    hard_cap = max(vmem_cap - (8 << 20), 16 << 20)
    vmem_limit = int(min(max(footprint + (4 << 20), 16 << 20), hard_cap))

    compiler_params = pltpu.CompilerParams(
        dimension_semantics=("parallel",),
        vmem_limit_bytes=vmem_limit)
    out_shape = jax.ShapeDtypeStruct((M2_pad, G * D), out_dtype)

    def build(resident_kwargs):
        return pl.pallas_call(
            _patch_embed_kernel,
            out_shape=out_shape,
            grid=grid,
            in_specs=[
                pl.BlockSpec((tm, G * L), lambda i: (i, 0)),
                pl.BlockSpec((G * L, G * D), lambda i: (0, 0), **resident_kwargs),
                pl.BlockSpec((tp, G * D), lambda i: (0, 0), **resident_kwargs),
            ],
            out_specs=pl.BlockSpec((tm, G * D), lambda i: (i, 0)),
            compiler_params=compiler_params,
        )

    try:
        # Constant-index blocks only need one VMEM buffer (never refetched).
        out2 = build({"pipeline_mode": pl.Buffered(1)})(x2, w2, pe_blk)
    except Exception:                                       # noqa: BLE001
        out2 = build({})(x2, w2, pe_blk)                    # older-jax fallback

    out = out2.reshape(M2_pad * G, D)[: BN * P_pad].reshape(BN, P_pad, D)
    return out[:, :P, :] if P_pad != P else out


# ------------------------------------------------------------------- glue ----
def make_positional_embedding(d_model, max_len=5000, dtype=jnp.float32):
    """Matches the PyTorch PositionalEmbedding buffer pe[max_len, d_model]."""
    position = jnp.arange(0, max_len, dtype=jnp.float32)[:, None]
    div_term = jnp.exp(jnp.arange(0, d_model, 2, dtype=jnp.float32)
                       * (-(math.log(10000.0) / d_model)))
    pe = jnp.zeros((max_len, d_model), dtype=jnp.float32)
    pe = pe.at[:, 0::2].set(jnp.sin(position * div_term))
    pe = pe.at[:, 1::2].set(jnp.cos(position * div_term))
    return pe.astype(dtype)


def patch_embedding_forward(x, w, pe_full, patch_len, stride, padding,
                            compute_dtype=jnp.bfloat16, out_dtype=jnp.bfloat16):
    """Replicates PatchEmbedding.forward (dropout = identity at inference).

    x       : [B, n_vars, seq_len] f32
    w       : [d_model, patch_len] (nn.Linear weight layout, no bias)
    pe_full : [max_len, d_model]
    returns : ([B * n_vars, num_patches, d_model], n_vars)
    """
    B, n_vars, seq_len = x.shape
    # ReplicationPad1d((0, padding)): repeat the last time step `padding` times.
    if padding > 0:
        x_pad = jnp.concatenate(
            [x, jnp.repeat(x[:, :, -1:], padding, axis=-1)], axis=-1)
    else:
        x_pad = x
    padded_len = seq_len + padding
    num_patches = (padded_len - patch_len) // stride + 1
    assert num_patches <= pe_full.shape[0]

    if stride == patch_len:
        # unfold == reshape: no gather, no extra HBM copy of the input.
        patches = x_pad[:, :, :num_patches * patch_len].reshape(
            B, n_vars, num_patches, patch_len)
    else:
        # TODO(synk): overlapping patches still materialize an HBM gather; fold
        # the extraction into the kernel (pl.ds over time) if this path is hot.
        idx = (jnp.arange(num_patches)[:, None] * stride
               + jnp.arange(patch_len)[None, :])
        patches = x_pad[:, :, idx]

    BN = B * n_vars
    out = patch_embed_pallas(
        patches.reshape(BN, num_patches, patch_len), w.T, pe_full[:num_patches],
        compute_dtype=compute_dtype, out_dtype=out_dtype)
    # nn.Dropout: identity in eval mode.
    return out, n_vars


# -------------------------------------------------------------------- main ---
if __name__ == "__main__":
    # Module hyperparameters.
    d_model = 32
    patch_len = 8
    stride = 8
    padding = 8

    # Input: [batch=2, n_vars=4, seq_len=16]
    B, n_vars, seq_len = 2, 4, 16

    key = jax.random.PRNGKey(0)
    kx, kw = jax.random.split(key)
    x = jax.random.normal(kx, (B, n_vars, seq_len), dtype=jnp.float32)
    # nn.Linear(patch_len, d_model, bias=False) weight: [d_model, patch_len]
    bound = 1.0 / math.sqrt(patch_len)
    w = jax.random.uniform(kw, (d_model, patch_len),
                           minval=-bound, maxval=bound, dtype=jnp.float32)
    pe_full = make_positional_embedding(d_model)

    out, nv = patch_embedding_forward(x, w, pe_full, patch_len, stride, padding)
    out = jax.block_until_ready(out)

    # Plain-JAX f32 reference.
    x_pad = jnp.concatenate([x, jnp.repeat(x[:, :, -1:], padding, axis=-1)], -1)
    P = (seq_len + padding - patch_len) // stride + 1
    idx = jnp.arange(P)[:, None] * stride + jnp.arange(patch_len)[None, :]
    ref = x_pad[:, :, idx].reshape(B * n_vars, P, patch_len) @ w.T + pe_full[:P]

    assert out.shape == (B * n_vars, P, d_model)
    assert nv == n_vars
    # bf16 activations/weights/output with f32 accumulation -> loose tolerance.
    assert jnp.allclose(out.astype(jnp.float32), ref, atol=5e-2, rtol=5e-2)

    print("KERNEL_OK")
</pallas_src>

<mosaic_0001>
module attributes {stable_mosaic.version = 11 : i64} {
  func.func @_patch_embed_kernel(%arg0: i32, %arg1: memref<8x128xf32, #tpu.memory_space<vmem>>, %arg2: memref<128x512xbf16, #tpu.memory_space<vmem>>, %arg3: memref<8x512xf32, #tpu.memory_space<vmem>>, %arg4: memref<8x512xbf16, #tpu.memory_space<vmem>>) attributes {dimension_semantics = [#tpu.dimension_semantics<parallel>], iteration_bounds = array<i64: 1>, scalar_prefetch = 0 : i64, scratch_operands = 0 : i64, tpu.core_type = #tpu.core_type<tc>, window_params = [{transform_indices = @transform_0, window_bounds = array<i64: 8, 128>}, {pipeline_mode = #tpu.pipeline_mode<synchronous>, transform_indices = @transform_1, window_bounds = array<i64: 128, 512>}, {pipeline_mode = #tpu.pipeline_mode<synchronous>, transform_indices = @transform_2, window_bounds = array<i64: 8, 512>}, {transform_indices = @transform_3, window_bounds = array<i64: 8, 512>}]} {
    %c0 = arith.constant 0 : index
    %c0_0 = arith.constant 0 : index
    %0 = vector.load %arg1[%c0, %c0_0] : memref<8x128xf32, #tpu.memory_space<vmem>>, vector<8x128xf32>
    %1 = arith.truncf %0 : vector<8x128xf32> to vector<8x128xbf16>
    %c0_1 = arith.constant 0 : index
    %c0_2 = arith.constant 0 : index
    %2 = vector.load %arg2[%c0_1, %c0_2] : memref<128x512xbf16, #tpu.memory_space<vmem>>, vector<128x512xbf16>
    %cst = arith.constant dense<0.000000e+00> : vector<8x512xf32>
    %3 = tpu.matmul %1, %2, %cst {dimension_numbers = #tpu.dot_dimension_numbers<[1], [0], [0], [1], [0, 0, 1, 1], [], []>} : vector<8x128xbf16>, vector<128x512xbf16>, vector<8x512xf32> -> vector<8x512xf32>
    %c0_3 = arith.constant 0 : index
    %c0_4 = arith.constant 0 : index
    %4 = vector.load %arg3[%c0_3, %c0_4] : memref<8x512xf32, #tpu.memory_space<vmem>>, vector<8x512xf32>
    %5 = arith.addf %3, %4 : vector<8x512xf32>
    %6 = arith.truncf %5 : vector<8x512xf32> to vector<8x512xbf16>
    %c0_5 = arith.constant 0 : index
    %c0_6 = arith.constant 0 : index
    %7 = vector.load %arg4[%c0_5, %c0_6] : memref<8x512xbf16, #tpu.memory_space<vmem>>, vector<8x512xbf16>
    tpu.vector_store %arg4[%c0_5, %c0_6], %6 {strides = array<i32>} : memref<8x512xbf16, #tpu.memory_space<vmem>>, vector<8x512xbf16>,
    return
  }
  func.func @transform_0(%arg0: i32) -> (i32, i32) {
    %c0_i32 = arith.constant 0 : i32
    %c0_i32_0 = arith.constant 0 : i32
    return %arg0, %c0_i32 : i32, i32
  }
  func.func @transform_1(%arg0: i32) -> (i32, i32) {
    %c0_i32 = arith.constant 0 : i32
    %c0_i32_0 = arith.constant 0 : i32
    %c0_i32_1 = arith.constant 0 : i32
    return %c0_i32, %c0_i32_0 : i32, i32
  }
  func.func @transform_2(%arg0: i32) -> (i32, i32) {
    %c0_i32 = arith.constant 0 : i32
    %c0_i32_0 = arith.constant 0 : i32
    %c0_i32_1 = arith.constant 0 : i32
    return %c0_i32, %c0_i32_0 : i32, i32
  }
  func.func @transform_3(%arg0: i32) -> (i32, i32) {
    %c0_i32 = arith.constant 0 : i32
    %c0_i32_0 = arith.constant 0 : i32
    return %arg0, %c0_i32 : i32, i32
  }
}

module attributes {stable_mosaic.version = 11 : i64} {
  func.func @_patch_embed_kernel(%arg0: i32, %arg1: memref<8x128xf32, #tpu.memory_space<vmem>>, %arg2: memref<128x512xbf16, #tpu.memory_space<vmem>>, %arg3: memref<8x512xf32, #tpu.memory_space<vmem>>, %arg4: memref<8x512xbf16, #tpu.memory_space<vmem>>) attributes {dimension_semantics = [#tpu.dimension_semantics<parallel>], iteration_bounds = array<i64: 1>, scalar_prefetch = 0 : i64, scratch_operands = 0 : i64, tpu.core_type = #tpu.core_type<tc>, window_params = [{transform_indices = @transform_0, window_bounds = array<i64: 8, 128>}, {pipeline_mode = #tpu.pipeline_mode<synchronous>, transform_indices = @transform_1, window_bounds = array<i64: 128, 512>}, {pipeline_mode = #tpu.pipeline_mode<synchronous>, transform_indices = @transform_2, window_bounds = array<i64: 8, 512>}, {transform_indices = @transform_3, window_bounds = array<i64: 8, 512>}]} {
    %c0 = arith.constant 0 : index
    %c0_0 = arith.constant 0 : index
    %0 = vector.load %arg1[%c0, %c0_0] : memref<8x128xf32, #tpu.memory_space<vmem>>, vector<8x128xf32>
    %1 = arith.truncf %0 : vector<8x128xf32> to vector<8x128xbf16>
    %c0_1 = arith.constant 0 : index
    %c0_2 = arith.constant 0 : index
    %2 = vector.load %arg2[%c0_1, %c0_2] : memref<128x512xbf16, #tpu.memory_space<vmem>>, vector<128x512xbf16>
    %cst = arith.constant dense<0.000000e+00> : vector<8x512xf32>
    %3 = tpu.matmul %1, %2, %cst {dimension_numbers = #tpu.dot_dimension_numbers<[1], [0], [0], [1], [0, 0, 1, 1], [], []>} : vector<8x128xbf16>, vector<128x512xbf16>, vector<8x512xf32> -> vector<8x512xf32>
    %c0_3 = arith.constant 0 : index
    %c0_4 = arith.constant 0 : index
    %4 = vector.load %arg3[%c0_3, %c0_4] : memref<8x512xf32, #tpu.memory_space<vmem>>, vector<8x512xf32>
    %5 = arith.addf %3, %4 : vector<8x512xf32>
    %6 = arith.truncf %5 : vector<8x512xf32> to vector<8x512xbf16>
    %c0_5 = arith.constant 0 : index
    %c0_6 = arith.constant 0 : index
    %7 = vector.load %arg4[%c0_5, %c0_6] : memref<8x512xbf16, #tpu.memory_space<vmem>>, vector<8x512xbf16>
    tpu.vector_store %arg4[%c0_5, %c0_6], %6 {strides = array<i32>} : memref<8x512xbf16, #tpu.memory_space<vmem>>, vector<8x512xbf16>,
    return
  }
  func.func @transform_0(%arg0: i32) -> (i32, i32) {
    %c0_i32 = arith.constant 0 : i32
    %c0_i32_0 = arith.constant 0 : i32
    return %arg0, %c0_i32 : i32, i32
  }
  func.func @transform_1(%arg0: i32) -> (i32, i32) {
    %c0_i32 = arith.constant 0 : i32
    %c0_i32_0 = arith.constant 0 : i32
    %c0_i32_1 = arith.constant 0 : i32
    return %c0_i32, %c0_i32_0 : i32, i32
  }
  func.func @transform_2(%arg0: i32) -> (i32, i32) {
    %c0_i32 = arith.constant 0 : i32
    %c0_i32_0 = arith.constant 0 : i32
    %c0_i32_1 = arith.constant 0 : i32
    return %c0_i32, %c0_i32_0 : i32, i32
  }
  func.func @transform_3(%arg0: i32) -> (i32, i32) {
    %c0_i32 = arith.constant 0 : i32
    %c0_i32_0 = arith.constant 0 : i32
    return %arg0, %c0_i32 : i32, i32
  }
}

</mosaic_0001>

<bundles_post_ra>
// kernel: tpu_custom_call.1
= control target key start
LH: loop header
LB: loop body
LE: loop exit
PB: predicated region body
PF: predicated region fallthrough
CT: control target
= control target key end

     0   :  { %8 = vsyncpa [#allocation3], 0  ;;  %s583_s0 = inlined_call_operand.hbm [shape: f32[8,128], index: 0, kind: input, shape index: {}]   ;;  %s584_s1 = inlined_call_operand.hbm [shape: bf16[128,512], index: 1, kind: input, shape index: {}]   ;;  %s585_s2 = inlined_call_operand.hbm [shape: f32[8,512], index: 2, kind: input, shape index: {}]   ;;  %s586_s3 = inlined_call_operand.hbm [shape: bf16[8,512], index: 3, kind: output, shape index: {}]  }
   0x1   :  { %9 = vsyncpa [#allocation6], 0 }
   0x2   :  { %10 = vsyncpa [#allocation4], 0  ;;  %s544_s12 = smov [#allocation5]  }
   0x3   :  { %s26_s13 = sshll.u32 %s544_s12, 4  ;;  %s27_s13 = int_to_ptr.vmem [resolvable:$true] %s26_s13 }
   0x4   :  { %s466_s14 = scalar_lea.vmem %s27_s13, 4096  ;;  %p471_p1 = scmp.lt.s32.totalorder %s27_s13, %s27_s13 }
   0x5   :  { %p467_p0 = scmp.ne.s32.totalorder %s27_s13, %s466_s14  ;;  %p472_p2 = scmp.lt.s32.totalorder %s466_s14, %s466_s14 }
   0x7   :  { %p473_p3 = por %p472_p2, %p471_p1 }
   0x9   :  { %p474_p4 = pnand %p473_p3, %p467_p0 }
   0xb   :  { %477 = shalt.err (!%p474_p4)
}
   0xc   :  { %s545_s15 = smov 256   ;;  %s546_s16 = smov 16  }
   0xd   :  { %32 = dma.hbm_to_vmem [thread:$0]  %s584_s1, 4096, %s27_s13, [#allocation6], %s545_s15, %s545_s15, %s546_s16  }
   0xe   :  { %s547_s19 = smov [#allocation2]   ;;  %s548_s21 = smov [#allocation7]  }
   0xf   :  { %s17_s20 = sshll.u32 %s547_s19, 4  ;;  %s39_s22 = sshll.u32 %s548_s21, 4  ;;  %s18_s20 = int_to_ptr.vmem [resolvable:$true] %s17_s20  ;;  %s40_s22 = int_to_ptr.vmem [resolvable:$true] %s39_s22 }
  0x10   :  { %s486_s23 = scalar_lea.vmem %s18_s20, 128  ;;  %p491_p6 = scmp.lt.s32.totalorder %s18_s20, %s18_s20 }
  0x11   :  { %p487_p5 = scmp.ne.s32.totalorder %s18_s20, %s486_s23  ;;  %p492_p7 = scmp.lt.s32.totalorder %s486_s23, %s486_s23 }
  0x13   :  { %p493_p8 = por %p492_p7, %p491_p6 }
  0x15   :  { %p494_p9 = pnand %p493_p8, %p487_p5 }
  0x17   :  { %497 = shalt.err (!%p494_p9)
}
  0x18   :  { %20 = dma.hbm_to_vmem [thread:$0]  %s583_s0, 128, %s18_s20, [#allocation3]  }
  0x19   :  { %s506_s26 = scalar_lea.vmem %s40_s22, 512  ;;  %p511_p11 = scmp.lt.s32.totalorder %s40_s22, %s40_s22 }
  0x1a   :  { %p507_p10 = scmp.ne.s32.totalorder %s40_s22, %s506_s26  ;;  %p512_p12 = scmp.lt.s32.totalorder %s506_s26, %s506_s26 }
  0x1c   :  { %p513_p13 = por %p512_p12, %p511_p11 }
  0x1e   :  { %p514_p0 = pnand %p513_p13, %p507_p10 }
  0x20   :  { %517 = shalt.err (!%p514_p0)
}
  0x21   :  { %42 = dma.hbm_to_vmem [thread:$0]  %s585_s2, 512, %s40_s22, [#allocation6]  }
  0x22   :  { %538 = dma.done.wait [#allocation3], 128  }
  0x23   :  { %539 = vsyncadd [#allocation3], 4294967168 }
  0x24   :  { %540 = dma.done.wait [#allocation6], 4608  }
  0x25   :  { %541 = vsyncadd [#allocation6], 4294962688  ;;  %v549_v0 = vmov 0   ;;  %v410_v1 = vld [vmem:[#allocation5 + $0xe4] ss:$16 sps:$4 sm:$0xff]   ;;  %v53_v33 = vld [vmem:[#allocation2] sm:$0xff] }
  0x26   :  { %283 = vmatprep.mubr.bf16.mxu0 %v549_v0  ;;  %324 = vmatprep.mubr.bf16.mxu1 %v549_v0  ;;  %v412_v2 = vld [vmem:[#allocation5 + $0xec] ss:$16 sps:$4 sm:$0xff]   ;;  %v414_v3 = vld [vmem:[#allocation5 + $0xe0] ss:$16 sps:$4 sm:$0xff]   ;;  %v415_v4 = vld [vmem:[#allocation5 + $0xe8] ss:$16 sps:$4 sm:$0xff]   ;;  %v54_v34 = vpack.c.bf16 %v53_v33, %v53_v33 }
  0x27   :  { %251 = vmatprep.subr.bf16.mxu0 %v410_v1  ;;  %292 = vmatprep.subr.bf16.mxu1 %v412_v2  ;;  %v416_v5 = vld [vmem:[#allocation5 + $0xc4] ss:$16 sps:$4 sm:$0xff]   ;;  %v418_v6 = vld [vmem:[#allocation5 + $0xcc] ss:$16 sps:$4 sm:$0xff]   ;;  %v420_v7 = vld [vmem:[#allocation5 + $0xc0] ss:$16 sps:$4 sm:$0xff]  }
  0x28   :  { %252 = vmatpush1.bf16.msra.mxu0 %v414_v3  ;;  %293 = vmatpush1.bf16.msra.mxu1 %v415_v4  ;;  %v421_v8 = vld [vmem:[#allocation5 + $0xc8] ss:$16 sps:$4 sm:$0xff]   ;;  %v422_v9 = vld [vmem:[#allocation5 + $0xa4] ss:$16 sps:$4 sm:$0xff]   ;;  %v424_v10 = vld [vmem:[#allocation5 + $0xac] ss:$16 sps:$4 sm:$0xff]  }
  0x29   :  { %253 = vmatprep.subr.bf16.mxu0 %v416_v5  ;;  %294 = vmatprep.subr.bf16.mxu1 %v418_v6  ;;  %v426_v11 = vld [vmem:[#allocation5 + $0xa0] ss:$16 sps:$4 sm:$0xff]   ;;  %v427_v12 = vld [vmem:[#allocation5 + $0xa8] ss:$16 sps:$4 sm:$0xff]   ;;  %v428_v13 = vld [vmem:[#allocation5 + $0x84] ss:$16 sps:$4 sm:$0xff]  }
  0x2a   :  { %v430_v14 = vld [vmem:[#allocation5 + $0x8c] ss:$16 sps:$4 sm:$0xff]   ;;  %v432_v15 = vld [vmem:[#allocation5 + $0x80] ss:$16 sps:$4 sm:$0xff]   ;;  %v433_v16 = vld [vmem:[#allocation5 + $0x88] ss:$16 sps:$4 sm:$0xff]  }
  0x2b   :  { %v434_v17 = vld [vmem:[#allocation5 + $0x64] ss:$16 sps:$4 sm:$0xff]   ;;  %v436_v18 = vld [vmem:[#allocation5 + $0x6c] ss:$16 sps:$4 sm:$0xff]   ;;  %v438_v19 = vld [vmem:[#allocation5 + $0x60] ss:$16 sps:$4 sm:$0xff]  }
  0x2c   :  { %254 = vmatpush1.bf16.msra.mxu0 %v420_v7  ;;  %295 = vmatpush1.bf16.msra.mxu1 %v421_v8  ;;  %v439_v20 = vld [vmem:[#allocation5 + $0x68] ss:$16 sps:$4 sm:$0xff]   ;;  %v440_v21 = vld [vmem:[#allocation5 + $0x44] ss:$16 sps:$4 sm:$0xff]   ;;  %v442_v22 = vld [vmem:[#allocation5 + $0x4c] ss:$16 sps:$4 sm:$0xff]  }
  0x2d   :  { %255 = vmatprep.subr.bf16.mxu0 %v422_v9  ;;  %296 = vmatprep.subr.bf16.mxu1 %v424_v10  ;;  %v444_v23 = vld [vmem:[#allocation5 + $0x40] ss:$16 sps:$4 sm:$0xff]   ;;  %v445_v24 = vld [vmem:[#allocation5 + $0x48] ss:$16 sps:$4 sm:$0xff]   ;;  %v446_v25 = vld [vmem:[#allocation5 + $0x24] ss:$16 sps:$4 sm:$0xff]  }
  0x2e   :  { %v448_v26 = vld [vmem:[#allocation5 + $0x2c] ss:$16 sps:$4 sm:$0xff]   ;;  %v450_v27 = vld [vmem:[#allocation5 + $0x20] ss:$16 sps:$4 sm:$0xff]   ;;  %v451_v28 = vld [vmem:[#allocation5 + $0x28] ss:$16 sps:$4 sm:$0xff]  }
  0x2f   :  { %v452_v29 = vld [vmem:[#allocation5 + $0x4] ss:$16 sps:$4 sm:$0xff]   ;;  %v454_v30 = vld [vmem:[#allocation5 + $0xc] ss:$16 sps:$4 sm:$0xff]   ;;  %v456_v31 = vld [vmem:[#allocation5] ss:$16 sps:$4 sm:$0xff]  }
  0x30   :  { %256 = vmatpush1.bf16.msra.mxu0 %v426_v11  ;;  %297 = vmatpush1.bf16.msra.mxu1 %v427_v12  ;;  %v457_v32 = vld [vmem:[#allocation5 + $0x8] ss:$16 sps:$4 sm:$0xff]   ;;  %v87_v35 = vld [vmem:[#allocation7] sm:$0xff]  ;;  %v89_v37 = vld [vmem:[#allocation7 + $0x10] sm:$0xff]  ;;  %s550_s0 = smov [#allocation8]  }
  0x31   :  { %257 = vmatprep.subr.bf16.mxu0 %v428_v13  ;;  %298 = vmatprep.subr.bf16.mxu1 %v430_v14  ;;  %v88_v39 = vld [vmem:[#allocation7 + $0x8] sm:$0xff]  ;;  %v90_v40 = vld [vmem:[#allocation7 + $0x18] sm:$0xff]  ;;  %s357_s2 = sshll.u32 %s550_s0, 4  ;;  %s358_s2 = int_to_ptr.vmem [resolvable:$true] %s357_s2 }
  0x32   :  { %s518_s28 = scalar_lea.vmem %s358_s2, 256  ;;  %p523_p2 = scmp.lt.s32.totalorder %s358_s2, %s358_s2 }
  0x33   :  { %p519_p1 = scmp.ne.s32.totalorder %s358_s2, %s518_s28  ;;  %p524_p3 = scmp.lt.s32.totalorder %s518_s28, %s518_s28 }
  0x34   :  { %258 = vmatpush1.bf16.msra.mxu0 %v432_v15  ;;  %299 = vmatpush1.bf16.msra.mxu1 %v433_v16 }
  0x35   :  { %259 = vmatprep.subr.bf16.mxu0 %v434_v17  ;;  %300 = vmatprep.subr.bf16.mxu1 %v436_v18  ;;  %p525_p4 = por %p524_p3, %p523_p2 }
  0x37   :  { %p526_p5 = pnand %p525_p4, %p519_p1 }
  0x38   :  { %260 = vmatpush1.bf16.msra.mxu0 %v438_v19  ;;  %301 = vmatpush1.bf16.msra.mxu1 %v439_v20 }
  0x39   :  { %261 = vmatprep.subr.bf16.mxu0 %v440_v21  ;;  %302 = vmatprep.subr.bf16.mxu1 %v442_v22 }
  0x3c   :  { %262 = vmatpush1.bf16.msra.mxu0 %v444_v23  ;;  %303 = vmatpush1.bf16.msra.mxu1 %v445_v24 }
  0x3d   :  { %263 = vmatprep.subr.bf16.mxu0 %v446_v25  ;;  %304 = vmatprep.subr.bf16.mxu1 %v448_v26 }
  0x40   :  { %264 = vmatpush1.bf16.msra.mxu0 %v450_v27  ;;  %305 = vmatpush1.bf16.msra.mxu1 %v451_v28 }
  0x41   :  { %265 = vmatprep.subr.bf16.mxu0 %v452_v29  ;;  %306 = vmatprep.subr.bf16.mxu1 %v454_v30 }
  0x44   :  { %266 = vmatpush1.bf16.msra.mxu0 %v456_v31  ;;  %307 = vmatpush1.bf16.msra.mxu1 %v457_v32 }
  0x47   :  { %284 = vmatmul.mubr.bf16.vlgmr.msra.gmra.mxu0 %v54_v34  ;;  %325 = vmatmul.mubr.bf16.vlgmr.msra.gmra.mxu1 %v54_v34 }
 0x107   :  { %v285_v36 = vpop.f32.mrf.mxu0  ;;  %v326_v38 = vpop.f32.mrf.mxu1 }
 0x108   :  { %v286_v43 = vadd.f32 %v285_v36, %v87_v35  ;;  %v327_v44 = vadd.f32 %v326_v38, %v89_v37 }
 0x109   :  { %v287_v41 = vpop.f32.mrf.mxu0  ;;  %v328_v42 = vpop.f32.mrf.mxu1 }
 0x10a   :  { %v288_v45 = vadd.f32 %v287_v41, %v88_v39  ;;  %v329_v46 = vadd.f32 %v328_v42, %v90_v40 }
 0x10b   :  { %v289_v47 = vpop.f32.mrf.mxu0  ;;  %v330_v48 = vpop.f32.mrf.mxu1 }
 0x10c   :  { %v401_v49 = vpack.c.bf16 %v288_v45, %v286_v43  ;;  %v402_v50 = vpack.c.bf16 %v329_v46, %v327_v44 }
 0x10d   :  { %v290_v51 = vpop.f32.mrf.mxu0  ;;  %v331_v52 = vpop.f32.mrf.mxu1 }
 0x10e   :  { %349 = vst [vmem:[#allocation8] sm:$0xff] %v401_v49  ;;  %350 = vst [vmem:[#allocation8 + $0x8] sm:$0xff] %v402_v50 }
 0x10f   :  { %529 = shalt.err (!%p526_p5)
}
 0x110   :  { %360 = dma.vmem_to_hbm [thread:$0]  %s358_s2, 256, %s586_s3, [#allocation4]  }
 0x111   :  { %542 = dma.done.wait [#allocation4], 256  }
 0x112   :  { %543 = vsyncadd [#allocation4], 4294967040 }
 0x113   :  { %364 = vsyncpa [#allocation3], 1 }
 0x114   :  { %365 = vsyncpa [#allocation6], 1 }
 0x115   :  { %366 = vsyncpa [#allocation4], 1 }

// kernel: tpu_custom_call.1
= control target key start
LH: loop header
LB: loop body
LE: loop exit
PB: predicated region body
PF: predicated region fallthrough
CT: control target
= control target key end

     0   :  { %8 = vsyncpa [#allocation3], 0  ;;  %s583_s0 = inlined_call_operand.hbm [shape: f32[8,128], index: 0, kind: input, shape index: {}]   ;;  %s584_s1 = inlined_call_operand.hbm [shape: bf16[128,512], index: 1, kind: input, shape index: {}]   ;;  %s585_s2 = inlined_call_operand.hbm [shape: f32[8,512], index: 2, kind: input, shape index: {}]   ;;  %s586_s3 = inlined_call_operand.hbm [shape: bf16[8,512], index: 3, kind: output, shape index: {}]  }
   0x1   :  { %9 = vsyncpa [#allocation6], 0 }
   0x2   :  { %10 = vsyncpa [#allocation4], 0  ;;  %s544_s12 = smov [#allocation5]  }
   0x3   :  { %s26_s13 = sshll.u32 %s544_s12, 4  ;;  %s27_s13 = int_to_ptr.vmem [resolvable:$true] %s26_s13 }
   0x4   :  { %s466_s14 = scalar_lea.vmem %s27_s13, 4096  ;;  %p471_p1 = scmp.lt.s32.totalorder %s27_s13, %s27_s13 }
   0x5   :  { %p467_p0 = scmp.ne.s32.totalorder %s27_s13, %s466_s14  ;;  %p472_p2 = scmp.lt.s32.totalorder %s466_s14, %s466_s14 }
   0x7   :  { %p473_p3 = por %p472_p2, %p471_p1 }
   0x9   :  { %p474_p4 = pnand %p473_p3, %p467_p0 }
   0xb   :  { %477 = shalt.err (!%p474_p4)
}
   0xc   :  { %s545_s15 = smov 256   ;;  %s546_s16 = smov 16  }
   0xd   :  { %32 = dma.hbm_to_vmem [thread:$0]  %s584_s1, 4096, %s27_s13, [#allocation6], %s545_s15, %s545_s15, %s546_s16  }
   0xe   :  { %s547_s19 = smov [#allocation2]   ;;  %s548_s21 = smov [#allocation7]  }
   0xf   :  { %s17_s20 = sshll.u32 %s547_s19, 4  ;;  %s39_s22 = sshll.u32 %s548_s21, 4  ;;  %s18_s20 = int_to_ptr.vmem [resolvable:$true] %s17_s20  ;;  %s40_s22 = int_to_ptr.vmem [resolvable:$true] %s39_s22 }
  0x10   :  { %s486_s23 = scalar_lea.vmem %s18_s20, 128  ;;  %p491_p6 = scmp.lt.s32.totalorder %s18_s20, %s18_s20 }
  0x11   :  { %p487_p5 = scmp.ne.s32.totalorder %s18_s20, %s486_s23  ;;  %p492_p7 = scmp.lt.s32.totalorder %s486_s23, %s486_s23 }
  0x13   :  { %p493_p8 = por %p492_p7, %p491_p6 }
  0x15   :  { %p494_p9 = pnand %p493_p8, %p487_p5 }
  0x17   :  { %497 = shalt.err (!%p494_p9)
}
  0x18   :  { %20 = dma.hbm_to_vmem [thread:$0]  %s583_s0, 128, %s18_s20, [#allocation3]  }
  0x19   :  { %s506_s26 = scalar_lea.vmem %s40_s22, 512  ;;  %p511_p11 = scmp.lt.s32.totalorder %s40_s22, %s40_s22 }
  0x1a   :  { %p507_p10 = scmp.ne.s32.totalorder %s40_s22, %s506_s26  ;;  %p512_p12 = scmp.lt.s32.totalorder %s506_s26, %s506_s26 }
  0x1c   :  { %p513_p13 = por %p512_p12, %p511_p11 }
  0x1e   :  { %p514_p0 = pnand %p513_p13, %p507_p10 }
  0x20   :  { %517 = shalt.err (!%p514_p0)
}
  0x21   :  { %42 = dma.hbm_to_vmem [thread:$0]  %s585_s2, 512, %s40_s22, [#allocation6]  }
  0x22   :  { %538 = dma.done.wait [#allocation3], 128  }
  0x23   :  { %539 = vsyncadd [#allocation3], 4294967168 }
  0x24   :  { %540 = dma.done.wait [#allocation6], 4608  }
  0x25   :  { %541 = vsyncadd [#allocation6], 4294962688  ;;  %v549_v0 = vmov 0   ;;  %v410_v1 = vld [vmem:[#allocation5 + $0xe4] ss:$16 sps:$4 sm:$0xff]   ;;  %v53_v33 = vld [vmem:[#allocation2] sm:$0xff] }
  0x26   :  { %283 = vmatprep.mubr.bf16.mxu0 %v549_v0  ;;  %324 = vmatprep.mubr.bf16.mxu1 %v549_v0  ;;  %v412_v2 = vld [vmem:[#allocation5 + $0xec] ss:$16 sps:$4 sm:$0xff]   ;;  %v414_v3 = vld [vmem:[#allocation5 + $0xe0] ss:$16 sps:$4 sm:$0xff]   ;;  %v415_v4 = vld [vmem:[#allocation5 + $0xe8] ss:$16 sps:$4 sm:$0xff]   ;;  %v54_v34 = vpack.c.bf16 %v53_v33, %v53_v33 }
  0x27   :  { %251 = vmatprep.subr.bf16.mxu0 %v410_v1  ;;  %292 = vmatprep.subr.bf16.mxu1 %v412_v2  ;;  %v416_v5 = vld [vmem:[#allocation5 + $0xc4] ss:$16 sps:$4 sm:$0xff]   ;;  %v418_v6 = vld [vmem:[#allocation5 + $0xcc] ss:$16 sps:$4 sm:$0xff]   ;;  %v420_v7 = vld [vmem:[#allocation5 + $0xc0] ss:$16 sps:$4 sm:$0xff]  }
  0x28   :  { %252 = vmatpush1.bf16.msra.mxu0 %v414_v3  ;;  %293 = vmatpush1.bf16.msra.mxu1 %v415_v4  ;;  %v421_v8 = vld [vmem:[#allocation5 + $0xc8] ss:$16 sps:$4 sm:$0xff]   ;;  %v422_v9 = vld [vmem:[#allocation5 + $0xa4] ss:$16 sps:$4 sm:$0xff]   ;;  %v424_v10 = vld [vmem:[#allocation5 + $0xac] ss:$16 sps:$4 sm:$0xff]  }
  0x29   :  { %253 = vmatprep.subr.bf16.mxu0 %v416_v5  ;;  %294 = vmatprep.subr.bf16.mxu1 %v418_v6  ;;  %v426_v11 = vld [vmem:[#allocation5 + $0xa0] ss:$16 sps:$4 sm:$0xff]   ;;  %v427_v12 = vld [vmem:[#allocation5 + $0xa8] ss:$16 sps:$4 sm:$0xff]   ;;  %v428_v13 = vld [vmem:[#allocation5 + $0x84] ss:$16 sps:$4 sm:$0xff]  }
  0x2a   :  { %v430_v14 = vld [vmem:[#allocation5 + $0x8c] ss:$16 sps:$4 sm:$0xff]   ;;  %v432_v15 = vld [vmem:[#allocation5 + $0x80] ss:$16 sps:$4 sm:$0xff]   ;;  %v433_v16 = vld [vmem:[#allocation5 + $0x88] ss:$16 sps:$4 sm:$0xff]  }
  0x2b   :  { %v434_v17 = vld [vmem:[#allocation5 + $0x64] ss:$16 sps:$4 sm:$0xff]   ;;  %v436_v18 = vld [vmem:[#allocation5 + $0x6c] ss:$16 sps:$4 sm:$0xff]   ;;  %v438_v19 = vld [vmem:[#allocation5 + $0x60] ss:$16 sps:$4 sm:$0xff]  }
  0x2c   :  { %254 = vmatpush1.bf16.msra.mxu0 %v420_v7  ;;  %295 = vmatpush1.bf16.msra.mxu1 %v421_v8  ;;  %v439_v20 = vld [vmem:[#allocation5 + $0x68] ss:$16 sps:$4 sm:$0xff]   ;;  %v440_v21 = vld [vmem:[#allocation5 + $0x44] ss:$16 sps:$4 sm:$0xff]   ;;  %v442_v22 = vld [vmem:[#allocation5 + $0x4c] ss:$16 sps:$4 sm:$0xff]  }
  0x2d   :  { %255 = vmatprep.subr.bf16.mxu0 %v422_v9  ;;  %296 = vmatprep.subr.bf16.mxu1 %v424_v10  ;;  %v444_v23 = vld [vmem:[#allocation5 + $0x40] ss:$16 sps:$4 sm:$0xff]   ;;  %v445_v24 = vld [vmem:[#allocation5 + $0x48] ss:$16 sps:$4 sm:$0xff]   ;;  %v446_v25 = vld [vmem:[#allocation5 + $0x24] ss:$16 sps:$4 sm:$0xff]  }
  0x2e   :  { %v448_v26 = vld [vmem:[#allocation5 + $0x2c] ss:$16 sps:$4 sm:$0xff]   ;;  %v450_v27 = vld [vmem:[#allocation5 + $0x20] ss:$16 sps:$4 sm:$0xff]   ;;  %v451_v28 = vld [vmem:[#allocation5 + $0x28] ss:$16 sps:$4 sm:$0xff]  }
  0x2f   :  { %v452_v29 = vld [vmem:[#allocation5 + $0x4] ss:$16 sps:$4 sm:$0xff]   ;;  %v454_v30 = vld [vmem:[#allocation5 + $0xc] ss:$16 sps:$4 sm:$0xff]   ;;  %v456_v31 = vld [vmem:[#allocation5] ss:$16 sps:$4 sm:$0xff]  }
  0x30   :  { %256 = vmatpush1.bf16.msra.mxu0 %v426_v11  ;;  %297 = vmatpush1.bf16.msra.mxu1 %v427_v12  ;;  %v457_v32 = vld [vmem:[#allocation5 + $0x8] ss:$16 sps:$4 sm:$0xff]   ;;  %v87_v35 = vld [vmem:[#allocation7] sm:$0xff]  ;;  %v89_v37 = vld [vmem:[#allocation7 + $0x10] sm:$0xff]  ;;  %s550_s0 = smov [#allocation8]  }
  0x31   :  { %257 = vmatprep.subr.bf16.mxu0 %v428_v13  ;;  %298 = vmatprep.subr.bf16.mxu1 %v430_v14  ;;  %v88_v39 = vld [vmem:[#allocation7 + $0x8] sm:$0xff]  ;;  %v90_v40 = vld [vmem:[#allocation7 + $0x18] sm:$0xff]  ;;  %s357_s2 = sshll.u32 %s550_s0, 4  ;;  %s358_s2 = int_to_ptr.vmem [resolvable:$true] %s357_s2 }
  0x32   :  { %s518_s28 = scalar_lea.vmem %s358_s2, 256  ;;  %p523_p2 = scmp.lt.s32.totalorder %s358_s2, %s358_s2 }
  0x33   :  { %p519_p1 = scmp.ne.s32.totalorder %s358_s2, %s518_s28  ;;  %p524_p3 = scmp.lt.s32.totalorder %s518_s28, %s518_s28 }
  0x34   :  { %258 = vmatpush1.bf16.msra.mxu0 %v432_v15  ;;  %299 = vmatpush1.bf16.msra.mxu1 %v433_v16 }
  0x35   :  { %259 = vmatprep.subr.bf16.mxu0 %v434_v17  ;;  %300 = vmatprep.subr.bf16.mxu1 %v436_v18  ;;  %p525_p4 = por %p524_p3, %p523_p2 }
  0x37   :  { %p526_p5 = pnand %p525_p4, %p519_p1 }
  0x38   :  { %260 = vmatpush1.bf16.msra.mxu0 %v438_v19  ;;  %301 = vmatpush1.bf16.msra.mxu1 %v439_v20 }
  0x39   :  { %261 = vmatprep.subr.bf16.mxu0 %v440_v21  ;;  %302 = vmatprep.subr.bf16.mxu1 %v442_v22 }
  0x3c   :  { %262 = vmatpush1.bf16.msra.mxu0 %v444_v23  ;;  %303 = vmatpush1.bf16.msra.mxu1 %v445_v24 }
  0x3d   :  { %263 = vmatprep.subr.bf16.mxu0 %v446_v25  ;;  %304 = vmatprep.subr.bf16.mxu1 %v448_v26 }
  0x40   :  { %264 = vmatpush1.bf16.msra.mxu0 %v450_v27  ;;  %305 = vmatpush1.bf16.msra.mxu1 %v451_v28 }
  0x41   :  { %265 = vmatprep.subr.bf16.mxu0 %v452_v29  ;;  %306 = vmatprep.subr.bf16.mxu1 %v454_v30 }
  0x44   :  { %266 = vmatpush1.bf16.msra.mxu0 %v456_v31  ;;  %307 = vmatpush1.bf16.msra.mxu1 %v457_v32 }
  0x47   :  { %284 = vmatmul.mubr.bf16.vlgmr.msra.gmra.mxu0 %v54_v34  ;;  %325 = vmatmul.mubr.bf16.vlgmr.msra.gmra.mxu1 %v54_v34 }
 0x107   :  { %v285_v36 = vpop.f32.mrf.mxu0  ;;  %v326_v38 = vpop.f32.mrf.mxu1 }
 0x108   :  { %v286_v43 = vadd.f32 %v285_v36, %v87_v35  ;;  %v327_v44 = vadd.f32 %v326_v38, %v89_v37 }
 0x109   :  { %v287_v41 = vpop.f32.mrf.mxu0  ;;  %v328_v42 = vpop.f32.mrf.mxu1 }
 0x10a   :  { %v288_v45 = vadd.f32 %v287_v41, %v88_v39  ;;  %v329_v46 = vadd.f32 %v328_v42, %v90_v40 }
 0x10b   :  { %v289_v47 = vpop.f32.mrf.mxu0  ;;  %v330_v48 = vpop.f32.mrf.mxu1 }
 0x10c   :  { %v401_v49 = vpack.c.bf16 %v288_v45, %v286_v43  ;;  %v402_v50 = vpack.c.bf16 %v329_v46, %v327_v44 }
 0x10d   :  { %v290_v51 = vpop.f32.mrf.mxu0  ;;  %v331_v52 = vpop.f32.mrf.mxu1 }
 0x10e   :  { %349 = vst [vmem:[#allocation8] sm:$0xff] %v401_v49  ;;  %350 = vst [vmem:[#allocation8 + $0x8] sm:$0xff] %v402_v50 }
 0x10f   :  { %529 = shalt.err (!%p526_p5)
}
 0x110   :  { %360 = dma.vmem_to_hbm [thread:$0]  %s358_s2, 256, %s586_s3, [#allocation4]  }
 0x111   :  { %542 = dma.done.wait [#allocation4], 256  }
 0x112   :  { %543 = vsyncadd [#allocation4], 4294967040 }
 0x113   :  { %364 = vsyncpa [#allocation3], 1 }
 0x114   :  { %365 = vsyncpa [#allocation6], 1 }
 0x115   :  { %366 = vsyncpa [#allocation4], 1 }

</bundles_post_ra>
